<compile_context>
chip_gen: v7x
topology: tpu7x:2x2x1
jax: 0.10.0
libtpu: 0.0.40
codegen_flags: <defaults>
</compile_context>

<pallas_src>
import jax
import jax.numpy as jnp
import numpy as np
from jax.experimental import pallas as pl
from jax.experimental.pallas import tpu as pltpu

# ----- small, deterministic problem configuration -------------------------------
B = 8                       # batch size (== args.batch_size, world_size == 1)
EMB = 32                    # backbone embedding dim (stand-in for ViT's 384)
MLP = (128, 128, 128)       # args.mlp = "128-128-128" -> num_features = 128 (lane-dense)
NUM_FEATURES = MLP[-1]
SIM_COEFF = 25.0
STD_COEFF = 25.0
COV_COEFF = 1.0
BN_EPS = 1e-5               # nn.BatchNorm1d default eps (training mode -> batch stats)

# offsets into the concatenated weight slab [w1; w2; w3]  (shape (EMB+MLP0+MLP1, F))
_W1_END = EMB
_W2_END = EMB + MLP[0]
_W3_END = EMB + MLP[0] + MLP[1]


def vicreg_kernel(x_ref, y_ref, w_ref, bn_ref, out_ref):
    # x_ref/y_ref: (B, EMB) backbone embeddings for the two augmented views
    # w_ref      : (EMB+MLP0+MLP1, F) concatenated [w1; w2; w3]
    # bn_ref     : (8, F) rows: b1, g1, be1, b2, g2, be2, <pad>, <pad>
    w1 = w_ref[0:_W1_END, :]
    w2 = w_ref[_W1_END:_W2_END, :]
    w3 = w_ref[_W2_END:_W3_END, :]

    b1 = bn_ref[0:1, :]
    g1 = bn_ref[1:2, :]
    be1 = bn_ref[2:3, :]
    b2 = bn_ref[3:4, :]
    g2 = bn_ref[4:5, :]
    be2 = bn_ref[5:6, :]

    def bn_relu(h, g, be):
        # training-mode BatchNorm1d, statistics computed PER VIEW, folded scale/shift.
        h3 = h.reshape(2, B, NUM_FEATURES)
        mu = jnp.mean(h3, axis=1, keepdims=True)                      # (2,1,F)
        centered = h3 - mu
        var = jnp.mean(centered * centered, axis=1, keepdims=True)    # two-pass variance
        scale = g * jax.lax.rsqrt(var + BN_EPS)                       # (2,1,F) tiny math
        out = centered * scale + be                                   # 2 big-tile VALU ops
        return jnp.maximum(out, 0.0).reshape(2 * B, NUM_FEATURES)

    # stack the two views in-register (tile-aligned: each view is one 8-sublane tile),
    # so each projector layer is a single shared-weight MXU matmul.
    xy = jnp.concatenate([x_ref[...], y_ref[...]], axis=0)            # (2B, EMB)

    h = jnp.dot(xy, w1, preferred_element_type=jnp.float32) + b1
    h = bn_relu(h, g1, be1)
    h = jnp.dot(h, w2, preferred_element_type=jnp.float32) + b2
    h = bn_relu(h, g2, be2)
    p = jnp.dot(h, w3, preferred_element_type=jnp.float32)            # (2B, F), no bias

    p3 = p.reshape(2, B, NUM_FEATURES)

    # invariance loss: F.mse_loss(x, y)
    diff = p3[0] - p3[1]
    repr_loss = jnp.mean(diff * diff)

    # FullGatherLayer with world_size == 1 is identity -> center per view over batch
    c3 = p3 - jnp.mean(p3, axis=1, keepdims=True)                     # (2, B, F)
    cx = c3[0]
    cy = c3[1]

    n = jnp.float32(B)
    # diag of cov == per-feature unbiased variance; reused by std-loss and cov-loss
    diag_x = jnp.sum(cx * cx, axis=0, keepdims=True) / (n - 1.0)      # (1, F)
    diag_y = jnp.sum(cy * cy, axis=0, keepdims=True) / (n - 1.0)

    std_x = jnp.sqrt(diag_x + 1e-4)
    std_y = jnp.sqrt(diag_y + 1e-4)
    std_loss = (jnp.mean(jnp.maximum(1.0 - std_x, 0.0)) / 2.0
                + jnp.mean(jnp.maximum(1.0 - std_y, 0.0)) / 2.0)

    # covariance via the Gram-trace identity:
    #   sum(cov_x^2) = ||cx @ cx.T||_F^2 / (n-1)^2   (likewise for y)
    # one (16,128)x(16,128)->(16,16) matmul contracting the feature axis; select the
    # two 8x8 per-view diagonal blocks of the Gram matrix.
    c2d = c3.reshape(2 * B, NUM_FEATURES)                              # (16, 128)
    gram = jax.lax.dot_general(c2d, c2d,
                               dimension_numbers=(((1,), (1,)), ((), ())),
                               preferred_element_type=jnp.float32)     # (16, 16)
    row_v = jax.lax.broadcasted_iota(jnp.int32, (2 * B, 2 * B), 0) < B
    col_v = jax.lax.broadcasted_iota(jnp.int32, (2 * B, 2 * B), 1) < B
    same_view = row_v == col_v
    gram_sq = jnp.sum(jnp.where(same_view, gram * gram, 0.0))          # ||Gx||^2 + ||Gy||^2

    inv_nm1_sq = 1.0 / ((n - 1.0) * (n - 1.0))
    # off-diagonal sum of squares = total Frobenius - diagonal (diag == diag_x / diag_y)
    cov_loss = (gram_sq * inv_nm1_sq
                - jnp.sum(diag_x * diag_x)
                - jnp.sum(diag_y * diag_y)) / NUM_FEATURES

    loss = SIM_COEFF * repr_loss + STD_COEFF * std_loss + COV_COEFF * cov_loss

    out_ref[0] = loss
    out_ref[1] = repr_loss
    out_ref[2] = std_loss
    out_ref[3] = cov_loss


def pack_params(params):
    """Pack 9 projector parameters into 2 lane-dense slabs (fewer, bigger DMAs)."""
    w1, b1, g1, be1, w2, b2, g2, be2, w3 = params
    w_cat = jnp.concatenate([w1, w2, w3], axis=0)                      # (EMB+F+F, F)
    bn_cat = jnp.concatenate(
        [b1, g1, be1, b2, g2, be2, jnp.zeros((2, NUM_FEATURES), jnp.float32)],
        axis=0)                                                        # (8, F)
    return w_cat, bn_cat


@jax.jit
def vicreg_forward(x, y, w_cat, bn_cat):
    vmem = pl.BlockSpec(memory_space=pltpu.MemorySpace.VMEM)
    out = pl.pallas_call(
        vicreg_kernel,
        out_shape=jax.ShapeDtypeStruct((4,), jnp.float32),
        in_specs=[vmem, vmem, vmem, vmem],
        out_specs=pl.BlockSpec(memory_space=pltpu.MemorySpace.SMEM),
    )(x, y, w_cat, bn_cat)
    return out[0], out[1], out[2], out[3]


def reference_forward(x, y, params):
    w1, b1, g1, be1, w2, b2, g2, be2, w3 = params

    def bn_relu(h, g, be):
        mu = h.mean(0, keepdims=True)
        var = ((h - mu) ** 2).mean(0, keepdims=True)
        return jnp.maximum((h - mu) / jnp.sqrt(var + BN_EPS) * g + be, 0.0)

    def project(z):
        h = bn_relu(z @ w1 + b1, g1, be1)
        h = bn_relu(h @ w2 + b2, g2, be2)
        return h @ w3

    px, py = project(x), project(y)
    repr_loss = jnp.mean((px - py) ** 2)
    cx = px - px.mean(0)
    cy = py - py.mean(0)
    std_x = jnp.sqrt(cx.var(0, ddof=1) + 1e-4)
    std_y = jnp.sqrt(cy.var(0, ddof=1) + 1e-4)
    std_loss = jnp.mean(jnp.maximum(1 - std_x, 0)) / 2 + jnp.mean(jnp.maximum(1 - std_y, 0)) / 2
    cov_x = cx.T @ cx / (B - 1)
    cov_y = cy.T @ cy / (B - 1)
    off = 1.0 - jnp.eye(NUM_FEATURES)
    cov_loss = (jnp.sum((cov_x * off) ** 2) / NUM_FEATURES
                + jnp.sum((cov_y * off) ** 2) / NUM_FEATURES)
    loss = SIM_COEFF * repr_loss + STD_COEFF * std_loss + COV_COEFF * cov_loss
    return loss, repr_loss, std_loss, cov_loss


if __name__ == "__main__":
    key = jax.random.PRNGKey(0)
    ks = jax.random.split(key, 10)

    # deterministic projector parameters
    # (Linear -> BN -> ReLU, Linear -> BN -> ReLU, Linear no-bias)
    w1 = jax.random.normal(ks[0], (EMB, MLP[0]), jnp.float32) / np.sqrt(EMB)
    b1 = jax.random.normal(ks[1], (1, MLP[0]), jnp.float32) * 0.01
    g1 = jnp.ones((1, MLP[0]), jnp.float32)
    be1 = jnp.zeros((1, MLP[0]), jnp.float32)
    w2 = jax.random.normal(ks[2], (MLP[0], MLP[1]), jnp.float32) / np.sqrt(MLP[0])
    b2 = jax.random.normal(ks[3], (1, MLP[1]), jnp.float32) * 0.01
    g2 = jnp.ones((1, MLP[1]), jnp.float32)
    be2 = jnp.zeros((1, MLP[1]), jnp.float32)
    w3 = jax.random.normal(ks[4], (MLP[1], MLP[2]), jnp.float32) / np.sqrt(MLP[1])
    params = (w1, b1, g1, be1, w2, b2, g2, be2, w3)
    w_cat, bn_cat = pack_params(params)

    # inputs: two augmented-view embeddings from the (omitted) frozen backbone
    x = jax.random.normal(ks[5], (B, EMB), jnp.float32)
    y = x + 0.1 * jax.random.normal(ks[6], (B, EMB), jnp.float32)

    loss, repr_loss, std_loss, cov_loss = jax.block_until_ready(
        vicreg_forward(x, y, w_cat, bn_cat))
    ref = reference_forward(x, y, params)

    np.testing.assert_allclose(np.array([loss, repr_loss, std_loss, cov_loss]),
                               np.array(ref), rtol=2e-3, atol=2e-4)
    print("KERNEL_OK")
</pallas_src>

<mosaic_0001>
module attributes {stable_mosaic.version = 11 : i64} {
  func.func @vicreg_kernel(%arg0: memref<8x32xf32, #tpu.memory_space<vmem>>, %arg1: memref<8x32xf32, #tpu.memory_space<vmem>>, %arg2: memref<288x128xf32, #tpu.memory_space<vmem>>, %arg3: memref<8x128xf32, #tpu.memory_space<vmem>>, %arg4: memref<4xf32, #tpu.memory_space<smem>>) attributes {dimension_semantics = [], scalar_prefetch = 0 : i64, scratch_operands = 0 : i64, tpu.core_type = #tpu.core_type<tc>} {
    %c0 = arith.constant 0 : index
    %c0_0 = arith.constant 0 : index
    %0 = vector.load %arg2[%c0, %c0_0] : memref<288x128xf32, #tpu.memory_space<vmem>>, vector<32x128xf32>
    %c32 = arith.constant 32 : index
    %c0_1 = arith.constant 0 : index
    %1 = vector.load %arg2[%c32, %c0_1] : memref<288x128xf32, #tpu.memory_space<vmem>>, vector<128x128xf32>
    %c160 = arith.constant 160 : index
    %c0_2 = arith.constant 0 : index
    %2 = vector.load %arg2[%c160, %c0_2] : memref<288x128xf32, #tpu.memory_space<vmem>>, vector<128x128xf32>
    %c0_3 = arith.constant 0 : index
    %c0_4 = arith.constant 0 : index
    %3 = vector.load %arg3[%c0_3, %c0_4] : memref<8x128xf32, #tpu.memory_space<vmem>>, vector<1x128xf32>
    %c1 = arith.constant 1 : index
    %c0_5 = arith.constant 0 : index
    %4 = vector.load %arg3[%c1, %c0_5] : memref<8x128xf32, #tpu.memory_space<vmem>>, vector<1x128xf32>
    %c2 = arith.constant 2 : index
    %c0_6 = arith.constant 0 : index
    %5 = vector.load %arg3[%c2, %c0_6] : memref<8x128xf32, #tpu.memory_space<vmem>>, vector<1x128xf32>
    %c3 = arith.constant 3 : index
    %c0_7 = arith.constant 0 : index
    %6 = vector.load %arg3[%c3, %c0_7] : memref<8x128xf32, #tpu.memory_space<vmem>>, vector<1x128xf32>
    %c4 = arith.constant 4 : index
    %c0_8 = arith.constant 0 : index
    %7 = vector.load %arg3[%c4, %c0_8] : memref<8x128xf32, #tpu.memory_space<vmem>>, vector<1x128xf32>
    %c5 = arith.constant 5 : index
    %c0_9 = arith.constant 0 : index
    %8 = vector.load %arg3[%c5, %c0_9] : memref<8x128xf32, #tpu.memory_space<vmem>>, vector<1x128xf32>
    %c0_10 = arith.constant 0 : index
    %c0_11 = arith.constant 0 : index
    %9 = vector.load %arg0[%c0_10, %c0_11] : memref<8x32xf32, #tpu.memory_space<vmem>>, vector<8x32xf32>
    %c0_12 = arith.constant 0 : index
    %c0_13 = arith.constant 0 : index
    %10 = vector.load %arg1[%c0_12, %c0_13] : memref<8x32xf32, #tpu.memory_space<vmem>>, vector<8x32xf32>
    %11 = tpu.concatenate %9, %10 in 0 : vector<8x32xf32>, vector<8x32xf32> -> vector<16x32xf32>
    %cst = arith.constant dense<0.000000e+00> : vector<16x128xf32>
    %12 = tpu.matmul %11, %0, %cst {dimension_numbers = #tpu.dot_dimension_numbers<[1], [0], [0], [1], [0, 0, 1, 1], [], []>} : vector<16x32xf32>, vector<32x128xf32>, vector<16x128xf32> -> vector<16x128xf32>
    %13 = vector.broadcast %3 : vector<1x128xf32> to vector<16x128xf32>
    %14 = arith.addf %12, %13 : vector<16x128xf32>
    %15 = vector.shape_cast %14 : vector<16x128xf32> to vector<2x8x128xf32>
    %cst_14 = arith.constant dense<0.000000e+00> : vector<2x128xf32>
    %16 = vector.multi_reduction <add>, %15, %cst_14 [1] : vector<2x8x128xf32> to vector<2x128xf32>
    %17 = vector.shape_cast %16 : vector<2x128xf32> to vector<2x1x128xf32>
    %cst_15 = arith.constant 8.000000e+00 : f32
    %18 = vector.broadcast %cst_15 : f32 to vector<2x1x128xf32>
    %19 = arith.divf %17, %18 : vector<2x1x128xf32>
    %20 = vector.broadcast %19 : vector<2x1x128xf32> to vector<2x8x128xf32>
    %21 = arith.subf %15, %20 : vector<2x8x128xf32>
    %22 = arith.mulf %21, %21 : vector<2x8x128xf32>
    %cst_16 = arith.constant dense<0.000000e+00> : vector<2x128xf32>
    %23 = vector.multi_reduction <add>, %22, %cst_16 [1] : vector<2x8x128xf32> to vector<2x128xf32>
    %24 = vector.shape_cast %23 : vector<2x128xf32> to vector<2x1x128xf32>
    %cst_17 = arith.constant 8.000000e+00 : f32
    %25 = vector.broadcast %cst_17 : f32 to vector<2x1x128xf32>
    %26 = arith.divf %24, %25 : vector<2x1x128xf32>
    %cst_18 = arith.constant 9.99999974E-6 : f32
    %27 = vector.broadcast %cst_18 : f32 to vector<2x1x128xf32>
    %28 = arith.addf %26, %27 : vector<2x1x128xf32>
    %29 = math.rsqrt %28 : vector<2x1x128xf32>
    %30 = vector.shape_cast %4 : vector<1x128xf32> to vector<1x1x128xf32>
    %31 = vector.broadcast %30 : vector<1x1x128xf32> to vector<2x1x128xf32>
    %32 = arith.mulf %31, %29 : vector<2x1x128xf32>
    %33 = vector.broadcast %32 : vector<2x1x128xf32> to vector<2x8x128xf32>
    %34 = arith.mulf %21, %33 : vector<2x8x128xf32>
    %35 = vector.shape_cast %5 : vector<1x128xf32> to vector<1x1x128xf32>
    %36 = vector.broadcast %35 : vector<1x1x128xf32> to vector<2x8x128xf32>
    %37 = arith.addf %34, %36 : vector<2x8x128xf32>
    %cst_19 = arith.constant 0.000000e+00 : f32
    %38 = vector.broadcast %cst_19 : f32 to vector<2x8x128xf32>
    %39 = arith.maximumf %37, %38 : vector<2x8x128xf32>
    %40 = vector.shape_cast %39 : vector<2x8x128xf32> to vector<16x128xf32>
    %cst_20 = arith.constant dense<0.000000e+00> : vector<16x128xf32>
    %41 = tpu.matmul %40, %1, %cst_20 {dimension_numbers = #tpu.dot_dimension_numbers<[1], [0], [0], [1], [0, 0, 1, 1], [], []>} : vector<16x128xf32>, vector<128x128xf32>, vector<16x128xf32> -> vector<16x128xf32>
    %42 = vector.broadcast %6 : vector<1x128xf32> to vector<16x128xf32>
    %43 = arith.addf %41, %42 : vector<16x128xf32>
    %44 = vector.shape_cast %43 : vector<16x128xf32> to vector<2x8x128xf32>
    %cst_21 = arith.constant dense<0.000000e+00> : vector<2x128xf32>
    %45 = vector.multi_reduction <add>, %44, %cst_21 [1] : vector<2x8x128xf32> to vector<2x128xf32>
    %46 = vector.shape_cast %45 : vector<2x128xf32> to vector<2x1x128xf32>
    %cst_22 = arith.constant 8.000000e+00 : f32
    %47 = vector.broadcast %cst_22 : f32 to vector<2x1x128xf32>
    %48 = arith.divf %46, %47 : vector<2x1x128xf32>
    %49 = vector.broadcast %48 : vector<2x1x128xf32> to vector<2x8x128xf32>
    %50 = arith.subf %44, %49 : vector<2x8x128xf32>
    %51 = arith.mulf %50, %50 : vector<2x8x128xf32>
    %cst_23 = arith.constant dense<0.000000e+00> : vector<2x128xf32>
    %52 = vector.multi_reduction <add>, %51, %cst_23 [1] : vector<2x8x128xf32> to vector<2x128xf32>
    %53 = vector.shape_cast %52 : vector<2x128xf32> to vector<2x1x128xf32>
    %cst_24 = arith.constant 8.000000e+00 : f32
    %54 = vector.broadcast %cst_24 : f32 to vector<2x1x128xf32>
    %55 = arith.divf %53, %54 : vector<2x1x128xf32>
    %cst_25 = arith.constant 9.99999974E-6 : f32
    %56 = vector.broadcast %cst_25 : f32 to vector<2x1x128xf32>
    %57 = arith.addf %55, %56 : vector<2x1x128xf32>
    %58 = math.rsqrt %57 : vector<2x1x128xf32>
    %59 = vector.shape_cast %7 : vector<1x128xf32> to vector<1x1x128xf32>
    %60 = vector.broadcast %59 : vector<1x1x128xf32> to vector<2x1x128xf32>
    %61 = arith.mulf %60, %58 : vector<2x1x128xf32>
    %62 = vector.broadcast %61 : vector<2x1x128xf32> to vector<2x8x128xf32>
    %63 = arith.mulf %50, %62 : vector<2x8x128xf32>
    %64 = vector.shape_cast %8 : vector<1x128xf32> to vector<1x1x128xf32>
    %65 = vector.broadcast %64 : vector<1x1x128xf32> to vector<2x8x128xf32>
    %66 = arith.addf %63, %65 : vector<2x8x128xf32>
    %cst_26 = arith.constant 0.000000e+00 : f32
    %67 = vector.broadcast %cst_26 : f32 to vector<2x8x128xf32>
    %68 = arith.maximumf %66, %67 : vector<2x8x128xf32>
    %69 = vector.shape_cast %68 : vector<2x8x128xf32> to vector<16x128xf32>
    %cst_27 = arith.constant dense<0.000000e+00> : vector<16x128xf32>
    %70 = tpu.matmul %69, %2, %cst_27 {dimension_numbers = #tpu.dot_dimension_numbers<[1], [0], [0], [1], [0, 0, 1, 1], [], []>} : vector<16x128xf32>, vector<128x128xf32>, vector<16x128xf32> -> vector<16x128xf32>
    %71 = vector.shape_cast %70 : vector<16x128xf32> to vector<2x8x128xf32>
    %72 = vector.extract_strided_slice %71 {offsets = [0, 0, 0], sizes = [1, 8, 128], strides = [1, 1, 1]} : vector<2x8x128xf32> to vector<1x8x128xf32>
    %73 = vector.shape_cast %72 : vector<1x8x128xf32> to vector<8x128xf32>
    %74 = vector.extract_strided_slice %71 {offsets = [1, 0, 0], sizes = [1, 8, 128], strides = [1, 1, 1]} : vector<2x8x128xf32> to vector<1x8x128xf32>
    %75 = vector.shape_cast %74 : vector<1x8x128xf32> to vector<8x128xf32>
    %76 = arith.subf %73, %75 : vector<8x128xf32>
    %77 = arith.mulf %76, %76 : vector<8x128xf32>
    %78 = vector.shape_cast %77 : vector<8x128xf32> to vector<1x8x128xf32>
    %cst_28 = arith.constant dense<0.000000e+00> : vector<1xf32>
    %79 = vector.multi_reduction <add>, %78, %cst_28 [1, 2] : vector<1x8x128xf32> to vector<1xf32>
    %80 = vector.shape_cast %79 : vector<1xf32> to vector<1x1x1xf32>
    %81 = vector.extract %80[0, 0, 0] : f32 from vector<1x1x1xf32>
    %cst_29 = arith.constant 1.024000e+03 : f32
    %82 = arith.divf %81, %cst_29 : f32
    %cst_30 = arith.constant dense<0.000000e+00> : vector<2x128xf32>
    %83 = vector.multi_reduction <add>, %71, %cst_30 [1] : vector<2x8x128xf32> to vector<2x128xf32>
    %84 = vector.shape_cast %83 : vector<2x128xf32> to vector<2x1x128xf32>
    %cst_31 = arith.constant 8.000000e+00 : f32
    %85 = vector.broadcast %cst_31 : f32 to vector<2x1x128xf32>
    %86 = arith.divf %84, %85 : vector<2x1x128xf32>
    %87 = vector.broadcast %86 : vector<2x1x128xf32> to vector<2x8x128xf32>
    %88 = arith.subf %71, %87 : vector<2x8x128xf32>
    %89 = vector.extract_strided_slice %88 {offsets = [0, 0, 0], sizes = [1, 8, 128], strides = [1, 1, 1]} : vector<2x8x128xf32> to vector<1x8x128xf32>
    %90 = vector.shape_cast %89 : vector<1x8x128xf32> to vector<8x128xf32>
    %91 = vector.extract_strided_slice %88 {offsets = [1, 0, 0], sizes = [1, 8, 128], strides = [1, 1, 1]} : vector<2x8x128xf32> to vector<1x8x128xf32>
    %92 = vector.shape_cast %91 : vector<1x8x128xf32> to vector<8x128xf32>
    %93 = arith.mulf %90, %90 : vector<8x128xf32>
    %cst_32 = arith.constant dense<0.000000e+00> : vector<128xf32>
    %94 = vector.multi_reduction <add>, %93, %cst_32 [0] : vector<8x128xf32> to vector<128xf32>
    %95 = vector.shape_cast %94 : vector<128xf32> to vector<1x128xf32>
    %cst_33 = arith.constant 8.000000e+00 : f32
    %cst_34 = arith.constant 1.000000e+00 : f32
    %96 = arith.subf %cst_33, %cst_34 : f32
    %97 = vector.broadcast %96 : f32 to vector<1x128xf32>
    %98 = arith.divf %95, %97 : vector<1x128xf32>
    %99 = arith.mulf %92, %92 : vector<8x128xf32>
    %cst_35 = arith.constant dense<0.000000e+00> : vector<128xf32>
    %100 = vector.multi_reduction <add>, %99, %cst_35 [0] : vector<8x128xf32> to vector<128xf32>
    %101 = vector.shape_cast %100 : vector<128xf32> to vector<1x128xf32>
    %cst_36 = arith.constant 8.000000e+00 : f32
    %cst_37 = arith.constant 1.000000e+00 : f32
    %102 = arith.subf %cst_36, %cst_37 : f32
    %103 = vector.broadcast %102 : f32 to vector<1x128xf32>
    %104 = arith.divf %101, %103 : vector<1x128xf32>
    %cst_38 = arith.constant 9.99999974E-5 : f32
    %105 = vector.broadcast %cst_38 : f32 to vector<1x128xf32>
    %106 = arith.addf %98, %105 : vector<1x128xf32>
    %107 = math.sqrt %106 : vector<1x128xf32>
    %cst_39 = arith.constant 9.99999974E-5 : f32
    %108 = vector.broadcast %cst_39 : f32 to vector<1x128xf32>
    %109 = arith.addf %104, %108 : vector<1x128xf32>
    %110 = math.sqrt %109 : vector<1x128xf32>
    %cst_40 = arith.constant 1.000000e+00 : f32
    %111 = vector.broadcast %cst_40 : f32 to vector<1x128xf32>
    %112 = arith.subf %111, %107 : vector<1x128xf32>
    %cst_41 = arith.constant 0.000000e+00 : f32
    %113 = vector.broadcast %cst_41 : f32 to vector<1x128xf32>
    %114 = arith.maximumf %112, %113 : vector<1x128xf32>
    %115 = vector.shape_cast %114 : vector<1x128xf32> to vector<1x1x128xf32>
    %cst_42 = arith.constant dense<0.000000e+00> : vector<1xf32>
    %116 = vector.multi_reduction <add>, %115, %cst_42 [1, 2] : vector<1x1x128xf32> to vector<1xf32>
    %117 = vector.shape_cast %116 : vector<1xf32> to vector<1x1x1xf32>
    %118 = vector.extract %117[0, 0, 0] : f32 from vector<1x1x1xf32>
    %cst_43 = arith.constant 1.280000e+02 : f32
    %119 = arith.divf %118, %cst_43 : f32
    %cst_44 = arith.constant 2.000000e+00 : f32
    %120 = arith.divf %119, %cst_44 : f32
    %cst_45 = arith.constant 1.000000e+00 : f32
    %121 = vector.broadcast %cst_45 : f32 to vector<1x128xf32>
    %122 = arith.subf %121, %110 : vector<1x128xf32>
    %cst_46 = arith.constant 0.000000e+00 : f32
    %123 = vector.broadcast %cst_46 : f32 to vector<1x128xf32>
    %124 = arith.maximumf %122, %123 : vector<1x128xf32>
    %125 = vector.shape_cast %124 : vector<1x128xf32> to vector<1x1x128xf32>
    %cst_47 = arith.constant dense<0.000000e+00> : vector<1xf32>
    %126 = vector.multi_reduction <add>, %125, %cst_47 [1, 2] : vector<1x1x128xf32> to vector<1xf32>
    %127 = vector.shape_cast %126 : vector<1xf32> to vector<1x1x1xf32>
    %128 = vector.extract %127[0, 0, 0] : f32 from vector<1x1x1xf32>
    %cst_48 = arith.constant 1.280000e+02 : f32
    %129 = arith.divf %128, %cst_48 : f32
    %cst_49 = arith.constant 2.000000e+00 : f32
    %130 = arith.divf %129, %cst_49 : f32
    %131 = arith.addf %120, %130 : f32
    %132 = vector.shape_cast %88 : vector<2x8x128xf32> to vector<16x128xf32>
    %cst_50 = arith.constant dense<0.000000e+00> : vector<16x16xf32>
    %133 = tpu.matmul %132, %132, %cst_50 {dimension_numbers = #tpu.dot_dimension_numbers<[1], [1], [0], [0], [0, 0, 1, 0], [], []>} : vector<16x128xf32>, vector<16x128xf32>, vector<16x16xf32> -> vector<16x16xf32>
    %134 = tpu.iota {dimensions = array<i32: 0>} : vector<16x16xi32>
    %c8_i32 = arith.constant 8 : i32
    %135 = vector.broadcast %c8_i32 : i32 to vector<16x16xi32>
    %136 = arith.cmpi slt, %134, %135 : vector<16x16xi32>
    %137 = tpu.iota {dimensions = array<i32: 1>} : vector<16x16xi32>
    %c8_i32_51 = arith.constant 8 : i32
    %138 = vector.broadcast %c8_i32_51 : i32 to vector<16x16xi32>
    %139 = arith.cmpi slt, %137, %138 : vector<16x16xi32>
    %140 = arith.xori %136, %139 : vector<16x16xi1>
    %cst_52 = arith.constant dense<true> : vector<16x16xi1>
    %141 = arith.xori %140, %cst_52 : vector<16x16xi1>
    %142 = arith.mulf %133, %133 : vector<16x16xf32>
    %cst_53 = arith.constant 0.000000e+00 : f32
    %143 = vector.broadcast %cst_53 : f32 to vector<16x16xf32>
    %144 = arith.select %141, %142, %143 : vector<16x16xi1>, vector<16x16xf32>
    %145 = vector.shape_cast %144 : vector<16x16xf32> to vector<1x16x16xf32>
    %cst_54 = arith.constant dense<0.000000e+00> : vector<1xf32>
    %146 = vector.multi_reduction <add>, %145, %cst_54 [1, 2] : vector<1x16x16xf32> to vector<1xf32>
    %147 = vector.shape_cast %146 : vector<1xf32> to vector<1x1x1xf32>
    %148 = vector.extract %147[0, 0, 0] : f32 from vector<1x1x1xf32>
    %cst_55 = arith.constant 8.000000e+00 : f32
    %cst_56 = arith.constant 1.000000e+00 : f32
    %149 = arith.subf %cst_55, %cst_56 : f32
    %cst_57 = arith.constant 8.000000e+00 : f32
    %cst_58 = arith.constant 1.000000e+00 : f32
    %150 = arith.subf %cst_57, %cst_58 : f32
    %151 = arith.mulf %149, %150 : f32
    %cst_59 = arith.constant 1.000000e+00 : f32
    %152 = arith.divf %cst_59, %151 : f32
    %153 = arith.mulf %148, %152 : f32
    %154 = arith.mulf %98, %98 : vector<1x128xf32>
    %155 = vector.shape_cast %154 : vector<1x128xf32> to vector<1x1x128xf32>
    %cst_60 = arith.constant dense<0.000000e+00> : vector<1xf32>
    %156 = vector.multi_reduction <add>, %155, %cst_60 [1, 2] : vector<1x1x128xf32> to vector<1xf32>
    %157 = vector.shape_cast %156 : vector<1xf32> to vector<1x1x1xf32>
    %158 = vector.extract %157[0, 0, 0] : f32 from vector<1x1x1xf32>
    %159 = arith.subf %153, %158 : f32
    %160 = arith.mulf %104, %104 : vector<1x128xf32>
    %161 = vector.shape_cast %160 : vector<1x128xf32> to vector<1x1x128xf32>
    %cst_61 = arith.constant dense<0.000000e+00> : vector<1xf32>
    %162 = vector.multi_reduction <add>, %161, %cst_61 [1, 2] : vector<1x1x128xf32> to vector<1xf32>
    %163 = vector.shape_cast %162 : vector<1xf32> to vector<1x1x1xf32>
    %164 = vector.extract %163[0, 0, 0] : f32 from vector<1x1x1xf32>
    %165 = arith.subf %159, %164 : f32
    %cst_62 = arith.constant 1.280000e+02 : f32
    %166 = arith.divf %165, %cst_62 : f32
    %cst_63 = arith.constant 2.500000e+01 : f32
    %167 = arith.mulf %cst_63, %82 : f32
    %cst_64 = arith.constant 2.500000e+01 : f32
    %168 = arith.mulf %cst_64, %131 : f32
    %169 = arith.addf %167, %168 : f32
    %cst_65 = arith.constant 1.000000e+00 : f32
    %170 = arith.mulf %cst_65, %166 : f32
    %171 = arith.addf %169, %170 : f32
    %c0_66 = arith.constant 0 : index
    %172 = memref.load %arg4[%c0_66] : memref<4xf32, #tpu.memory_space<smem>>
    memref.store %171, %arg4[%c0_66] : memref<4xf32, #tpu.memory_space<smem>>
    %c1_67 = arith.constant 1 : index
    %173 = memref.load %arg4[%c1_67] : memref<4xf32, #tpu.memory_space<smem>>
    memref.store %82, %arg4[%c1_67] : memref<4xf32, #tpu.memory_space<smem>>
    %c2_68 = arith.constant 2 : index
    %174 = memref.load %arg4[%c2_68] : memref<4xf32, #tpu.memory_space<smem>>
    memref.store %131, %arg4[%c2_68] : memref<4xf32, #tpu.memory_space<smem>>
    %c3_69 = arith.constant 3 : index
    %175 = memref.load %arg4[%c3_69] : memref<4xf32, #tpu.memory_space<smem>>
    memref.store %166, %arg4[%c3_69] : memref<4xf32, #tpu.memory_space<smem>>
    return
  }
}

</mosaic_0001>

<bundles_post_ra>
// kernel: vicreg_forward.1
= control target key start
LH: loop header
LB: loop body
LE: loop exit
PB: predicated region body
PF: predicated region fallthrough
CT: control target
= control target key end

     0   :  { %9 = vsyncpa [#allocation3], 0  ;;  %s1159_s0 = inlined_call_operand.hbm [shape: f32[8,32], index: 0, kind: input, shape index: {}]   ;;  %s1160_s1 = inlined_call_operand.hbm [shape: f32[8,32], index: 1, kind: input, shape index: {}]   ;;  %s1161_s2 = inlined_call_operand.hbm [shape: f32[288,128], index: 2, kind: input, shape index: {}]   ;;  %s1162_s3 = inlined_call_operand.vmem [shape: f32[8,128], index: 3, kind: input, shape index: {}]   ;;  %s1163_s4 = inlined_call_operand.vmem [shape: f32[4], index: 4, kind: output, shape index: {}]  }
   0x1   :  { %10 = vsyncpa [#allocation6], 0 }
   0x2   :  { %11 = vsyncpa [#allocation4], 0  ;;  %s1045_s15 = smov [#allocation5]   ;;  %s1046_s17 = smov [#allocation2]  }
   0x3   :  { %s28_s16 = sshll.u32 %s1045_s15, 4  ;;  %s18_s18 = sshll.u32 %s1046_s17, 4  ;;  %s29_s16 = int_to_ptr.vmem [resolvable:$true] %s28_s16  ;;  %s19_s18 = int_to_ptr.vmem [resolvable:$true] %s18_s18 }
   0x4   :  { %s961_s21 = scalar_lea.hbm %s1160_s1, 128 }
   0x5   :  { %p962_p0 = scmp.ne.s32.totalorder %s1160_s1, %s961_s21  ;;  %p965_p1 = scmp.lt.u32.totalorder %s961_s21, %s1160_s1 }
   0x7   :  { %p967_p2 = pnand %p965_p1, %p962_p0 }
   0x9   :  { %970 = shalt.err (!%p967_p2)
}
   0xa   :  { %s971_s26 = scalar_lea.vmem %s29_s16, 128  ;;  %p976_p4 = scmp.lt.s32.totalorder %s29_s16, %s29_s16 }
   0xb   :  { %p972_p3 = scmp.ne.s32.totalorder %s29_s16, %s971_s26  ;;  %p977_p5 = scmp.lt.s32.totalorder %s971_s26, %s971_s26 }
   0xd   :  { %p978_p6 = por %p977_p5, %p976_p4 }
   0xf   :  { %p979_p7 = pnand %p978_p6, %p972_p3 }
  0x11   :  { %982 = shalt.err (!%p979_p7)
}
  0x12   :  { %31 = dma.hbm_to_vmem [thread:$0]  %s1160_s1, 128, %s29_s16, [#allocation6]  }
  0x13   :  { %s983_s5 = scalar_lea.hbm %s1159_s0, 128 }
  0x14   :  { %p984_p8 = scmp.ne.s32.totalorder %s1159_s0, %s983_s5  ;;  %p987_p9 = scmp.lt.u32.totalorder %s983_s5, %s1159_s0 }
  0x16   :  { %p989_p10 = pnand %p987_p9, %p984_p8 }
  0x18   :  { %992 = shalt.err (!%p989_p10)
}
  0x19   :  { %s993_s10 = scalar_lea.vmem %s19_s18, 128  ;;  %p998_p12 = scmp.lt.s32.totalorder %s19_s18, %s19_s18 }
  0x1a   :  { %p994_p11 = scmp.ne.s32.totalorder %s19_s18, %s993_s10  ;;  %p999_p13 = scmp.lt.s32.totalorder %s993_s10, %s993_s10 }
  0x1c   :  { %p1000_p0 = por %p999_p13, %p998_p12 }
  0x1e   :  { %p1001_p1 = pnand %p1000_p0, %p994_p11 }
  0x20   :  { %1004 = shalt.err (!%p1001_p1)
}
  0x21   :  { %21 = dma.hbm_to_vmem [thread:$0]  %s1159_s0, 128, %s19_s18, [#allocation3]  }
  0x22   :  { %s1047_s12 = smov [#allocation7]   ;;  %s1005_s16 = scalar_lea.hbm %s1161_s2, 4608 }
  0x23   :  { %s37_s13 = sshll.u32 %s1047_s12, 4  ;;  %p1006_p2 = scmp.ne.s32.totalorder %s1161_s2, %s1005_s16  ;;  %s38_s13 = int_to_ptr.vmem [resolvable:$true] %s37_s13 }
  0x24   :  { %p1009_p3 = scmp.lt.u32.totalorder %s1005_s16, %s1161_s2 }
  0x26   :  { %p1011_p4 = pnand %p1009_p3, %p1006_p2 }
  0x28   :  { %1014 = shalt.err (!%p1011_p4)
}
  0x29   :  { %s1015_s22 = scalar_lea.vmem %s38_s13, 4608  ;;  %p1020_p6 = scmp.lt.s32.totalorder %s38_s13, %s38_s13 }
  0x2a   :  { %p1016_p5 = scmp.ne.s32.totalorder %s38_s13, %s1015_s22  ;;  %p1021_p7 = scmp.lt.s32.totalorder %s1015_s22, %s1015_s22 }
  0x2c   :  { %p1022_p8 = por %p1021_p7, %p1020_p6 }
  0x2e   :  { %p1023_p9 = pnand %p1022_p8, %p1016_p5 }
  0x30   :  { %1026 = shalt.err (!%p1023_p9)
}
  0x31   :  { %s1048_s0 = smov 128   ;;  %s1049_s18 = smov 8  }
  0x32   :  { %43 = dma.hbm_to_vmem [thread:$0]  %s1161_s2, 4608, %s38_s13, [#allocation6], %s1048_s0, %s1048_s0, %s1049_s18  }
  0x33   :  { %1039 = dma.done.wait [#allocation3], 128  }
  0x34   :  { %1040 = vsyncadd [#allocation3], 4294967168 }
  0x35   :  { %1041 = dma.done.wait [#allocation6], 4736  }
  0x36   :  { %1042 = vsyncadd [#allocation6], 4294962560  ;;  %vm103_vm0 = vcmask 261120   ;;  %v55_v0 = vld [vmem:[#allocation7] sm:$0xff]  ;;  %v56_v1 = vld [vmem:[#allocation7 + $0x8] sm:$0xff]  ;;  %vm517_vm1 = vcmask 1040384  }
  0x37   :  { %v57_v2 = vld [vmem:[#allocation7 + $0x10] sm:$0xff]  ;;  %v854_v3 = vpack.c.bf16 %v56_v1, %v55_v0  ;;  %v58_v4 = vld [vmem:[#allocation7 + $0x18] sm:$0xff]  ;;  %v59_v8 = vld [vmem:[#allocation7 + $0x20] sm:$0xff]  ;;  %vm1050_vm7 = vmmov 1   ;;  %vm644_vm11 = vcmask 130048   ;;  %s703_s26 = sshll.u32 %s1163_s4, 4  ;;  %s704_s26 = int_to_ptr.vmem [resolvable:$true] %s703_s26 }
  0x38   :  { %v97_v5 = vld [vmem:[#allocation2] sm:$0xff]  ;;  %v858_v6 = vpack.c.bf16 %v58_v4, %v57_v2  ;;  %v98_v7 = vld [vmem:[#allocation5] sm:$0xff]  ;;  %v60_v9 = vld [vmem:[#allocation7 + $0x28] sm:$0xff]  ;;  %s1027_s29 = scalar_lea.vmem %s704_s26, 16  ;;  %p1032_p11 = scmp.lt.s32.totalorder %s704_s26, %s704_s26 }
  0x39   :  { %774 = vmatprep.mubr.msk.f32.mxu0 %vm103_vm0, %v97_v5  ;;  %855 = vmatprep.subr.bf16.mxu0 %v854_v3  ;;  %v862_v10 = vpack.c.bf16 %v60_v9, %v59_v8  ;;  %v61_v11 = vld [vmem:[#allocation7 + $0x30] sm:$0xff]  ;;  %v62_v12 = vld [vmem:[#allocation7 + $0x38] sm:$0xff]  ;;  %v63_v14 = vld [vmem:[#allocation7 + $0x40] sm:$0xff]  ;;  %p1028_p10 = scmp.ne.s32.totalorder %s704_s26, %s1027_s29  ;;  %p1033_p12 = scmp.lt.s32.totalorder %s1027_s29, %s1027_s29 }
  0x3a   :  { %857 = vmatpush3.bf16.msra.mxu0 %v854_v3  ;;  %v866_v13 = vpack.c.bf16 %v62_v12, %v61_v11  ;;  %v64_v15 = vld [vmem:[#allocation7 + $0x48] sm:$0xff]  ;;  %v65_v17 = vld [vmem:[#allocation7 + $0x50] sm:$0xff]  ;;  %v66_v18 = vld [vmem:[#allocation7 + $0x58] sm:$0xff] }
  0x3b   :  { %859 = vmatprep.subr.bf16.mxu0 %v858_v6  ;;  %863 = vmatprep.subr.bf16.mxu1 %v862_v10  ;;  %v870_v16 = vpack.c.bf16 %v64_v15, %v63_v14  ;;  %v67_v19 = vld [vmem:[#allocation7 + $0x60] sm:$0xff]  ;;  %v874_v20 = vpack.c.bf16 %v66_v18, %v65_v17  ;;  %v68_v21 = vld [vmem:[#allocation7 + $0x68] sm:$0xff]  ;;  %v69_v23 = vld [vmem:[#allocation7 + $0x70] sm:$0xff]  ;;  %p1034_p13 = por %p1033_p12, %p1032_p11 }
  0x3c   :  { %865 = vmatpush3.bf16.msra.mxu1 %v862_v10  ;;  %v878_v22 = vpack.c.bf16 %v68_v21, %v67_v19  ;;  %v70_v24 = vld [vmem:[#allocation7 + $0x78] sm:$0xff]  ;;  %v71_v26 = vld [vmem:[#allocation7 + $0x80] sm:$0xff]  ;;  %v72_v27 = vld [vmem:[#allocation7 + $0x88] sm:$0xff] }
  0x3d   :  { %867 = vmatprep.subr.bf16.mxu1 %v866_v13  ;;  %v882_v25 = vpack.c.bf16 %v70_v24, %v69_v23  ;;  %v886_v28 = vpack.c.bf16 %v72_v27, %v71_v26  ;;  %v73_v29 = vld [vmem:[#allocation7 + $0x90] sm:$0xff]  ;;  %v74_v30 = vld [vmem:[#allocation7 + $0x98] sm:$0xff]  ;;  %v714_v32 = vld [vmem:[%s1162_s3] ss:$0 sm:$0xff]  ;;  %p1035_p0 = pnand %p1034_p13, %p1028_p10 }
  0x3e   :  { %861 = vmatpush3.bf16.msra.mxu0 %v858_v6  ;;  %v890_v31 = vpack.c.bf16 %v74_v30, %v73_v29  ;;  %v92_v9 = vld [vmem:[%s1162_s3 + $0x1] sm:$0x1]  ;;  %v75_v24 = vld [vmem:[#allocation7 + $0xa0] sm:$0xff]  ;;  %v77_v27 = vld [vmem:[#allocation7 + $0xb0] sm:$0xff] }
  0x3f   :  { %v79_v30 = vld [vmem:[#allocation7 + $0xc0] sm:$0xff] }
  0x40   :  { %869 = vmatpush3.bf16.msra.mxu1 %v866_v13 }
  0x41   :  { %775 = vmatmul.mubr.msk.f32.vlgmr.msra.gmra.mrb[0].mxu0 %vm103_vm0, %v98_v7  ;;  %871 = vmatprep.subr.bf16.mxu1 %v870_v16  ;;  %v224_v7 = vlaneseq }
  0x43   :  { %v225_v8 = vshrl.u32 %v224_v7, 7 }
  0x44   :  { %873 = vmatpush3.bf16.msra.mxu1 %v870_v16  ;;  %v717_v16 = vld [vmem:[%s1162_s3 + $0x2] ss:$0 sm:$0xff] }
  0x45   :  { %875 = vmatprep.subr.bf16.mxu1 %v874_v20  ;;  %v1120_v10 = vsub.s32 0, %v225_v8 }
  0x48   :  { %877 = vmatpush3.bf16.msra.mxu1 %v874_v20 }
  0x49   :  { %879 = vmatprep.subr.bf16.mxu1 %v878_v22 }
  0x4c   :  { %881 = vmatpush3.bf16.msra.mxu1 %v878_v22 }
  0x4d   :  { %883 = vmatprep.subr.bf16.mxu1 %v882_v25 }
  0x50   :  { %885 = vmatpush3.bf16.msra.mxu1 %v882_v25  ;;  %v76_v25 = vld [vmem:[#allocation7 + $0xa8] sm:$0xff] }
  0x51   :  { %887 = vmatprep.subr.bf16.mxu1 %v886_v28  ;;  %v894_v26 = vpack.c.bf16 %v76_v25, %v75_v24  ;;  %v95_v25 = vld [vmem:[%s1162_s3 + $0x4] sm:$0x1] }
  0x53   :  { %895 = vmatprep.subr.bf16.mxu0 %v894_v26 }
  0x54   :  { %889 = vmatpush3.bf16.msra.mxu1 %v886_v28  ;;  %897 = vmatpush3.bf16.msra.mxu0 %v894_v26  ;;  %v78_v28 = vld [vmem:[#allocation7 + $0xb8] sm:$0xff] }
  0x55   :  { %891 = vmatprep.subr.bf16.mxu1 %v890_v31  ;;  %v898_v29 = vpack.c.bf16 %v78_v28, %v77_v27 }
  0x57   :  { %899 = vmatprep.subr.bf16.mxu0 %v898_v29 }
  0x58   :  { %893 = vmatpush3.bf16.msra.mxu1 %v890_v31  ;;  %901 = vmatpush3.bf16.msra.mxu0 %v898_v29  ;;  %v80_v31 = vld [vmem:[#allocation7 + $0xc8] sm:$0xff] }
 0x114   :  { %v776_v33 = vpop.f32.mrb[0].mxu0 }
 0x115   :  { %v182_v34 = vadd.f32 %v776_v33, %v714_v32  ;;  %v176_v35 = vpop.f32.mrb[1].mxu0  ;;  %v81_v33 = vld [vmem:[#allocation7 + $0xd0] sm:$0xff] }
 0x116   :  { %v177_v36 = vadd.f32 %v714_v32, %v176_v35  ;;  %v902_v32 = vpack.c.bf16 %v80_v31, %v79_v30  ;;  %v719_v31 = vld [vmem:[%s1162_s3 + $0x5] ss:$0 sm:$0xff] }
 0x117   :  { %v191_v37 = vrot.slane %v182_v34, 4 }
 0x118   :  { %v185_v38 = vrot.slane %v177_v36, 4  ;;  %903 = vmatprep.subr.bf16.mxu0 %v902_v32 }
 0x119   :  { %v192_v39 = vadd.f32 %v191_v37, %v182_v34  ;;  %905 = vmatpush3.bf16.msra.mxu0 %v902_v32  ;;  %v84_v37 = vld [vmem:[#allocation7 + $0xe8] sm:$0xff] }
 0x11a   :  { %v186_v40 = vadd.f32 %v185_v38, %v177_v36 }
 0x11b   :  { %v193_v41 = vrot.slane %v192_v39, 2 }
 0x11c   :  { %v187_v42 = vrot.slane %v186_v40, 2 }
 0x11d   :  { %v194_v43 = vadd.f32 %v193_v41, %v192_v39  ;;  %v85_v39 = vld [vmem:[#allocation7 + $0xf0] sm:$0xff] }
 0x11e   :  { %v188_v44 = vadd.f32 %v187_v42, %v186_v40  ;;  %v86_v40 = vld [vmem:[#allocation7 + $0xf8] sm:$0xff]  ;;  %v87_v42 = vld [vmem:[#allocation7 + $0x100] sm:$0xff] }
 0x11f   :  { %v195_v45 = vrot.slane %v194_v43, 1  ;;  %v914_v41 = vpack.c.bf16 %v86_v40, %v85_v39 }
 0x120   :  { %v189_v46 = vrot.slane %v188_v44, 1 }
 0x121   :  { %v196_v47 = vadd.f32 %v195_v45, %v194_v43  ;;  %v88_v43 = vld [vmem:[#allocation7 + $0x108] sm:$0xff]  ;;  %v89_v45 = vld [vmem:[#allocation7 + $0x110] sm:$0xff] }
 0x122   :  { %v190_v48 = vadd.f32 %v189_v46, %v188_v44  ;;  %v918_v44 = vpack.c.bf16 %v88_v43, %v87_v42  ;;  %v90_v46 = vld [vmem:[#allocation7 + $0x118] sm:$0xff] }
 0x123   :  { %v199_v49 = vmul.f32 0.125, %v196_v47  ;;  %v922_v47 = vpack.c.bf16 %v90_v46, %v89_v45 }
 0x124   :  { %v198_v50 = vmul.f32 0.125, %v190_v48  ;;  %v718_v48 = vld [vmem:[%s1162_s3 + $0x3] ss:$0 sm:$0xff] }
 0x125   :  { %v201_v51 = vsub.f32 %v182_v34, %v199_v49  ;;  %v82_v34 = vld [vmem:[#allocation7 + $0xd8] sm:$0xff] }
 0x126   :  { %v200_v52 = vsub.f32 %v177_v36, %v198_v50  ;;  %v906_v35 = vpack.c.bf16 %v82_v34, %v81_v33  ;;  %v83_v36 = vld [vmem:[#allocation7 + $0xe0] sm:$0xff] }
 0x127   :  { %v203_v53 = vmul.f32 %v201_v51, %v201_v51  ;;  %v910_v38 = vpack.c.bf16 %v84_v37, %v83_v36 }
 0x128   :  { %v202_v54 = vmul.f32 %v200_v52, %v200_v52  ;;  %907 = vmatprep.subr.bf16.mxu0 %v906_v35 }
 0x129   :  { %v210_v55 = vrot.slane %v203_v53, 4  ;;  %909 = vmatpush3.bf16.msra.mxu0 %v906_v35 }
 0x12a   :  { %v204_v56 = vrot.slane %v202_v54, 4  ;;  %911 = vmatprep.subr.bf16.mxu0 %v910_v38 }
 0x12b   :  { %v211_v57 = vadd.f32 %v210_v55, %v203_v53 }
 0x12c   :  { %v205_v58 = vadd.f32 %v204_v56, %v202_v54 }
 0x12d   :  { %v212_v59 = vrot.slane %v211_v57, 2  ;;  %913 = vmatpush3.bf16.msra.mxu0 %v910_v38 }
 0x12e   :  { %v206_v60 = vrot.slane %v205_v58, 2  ;;  %915 = vmatprep.subr.bf16.mxu0 %v914_v41 }
 0x12f   :  { %v213_v61 = vadd.f32 %v212_v59, %v211_v57 }
 0x130   :  { %v207_v62 = vadd.f32 %v206_v60, %v205_v58 }
 0x131   :  { %v214_v63 = vrot.slane %v213_v61, 1  ;;  %917 = vmatpush3.bf16.msra.mxu0 %v914_v41 }
 0x132   :  { %v208_v0 = vrot.slane %v207_v62, 1  ;;  %919 = vmatprep.subr.bf16.mxu0 %v918_v44 }
 0x133   :  { %v215_v1 = vadd.f32 %v214_v63, %v213_v61 }
 0x134   :  { %v209_v2 = vadd.f32 %v208_v0, %v207_v62 }
 0x135   :  { %v217_v3 = vmul.f32 0.125, %v215_v1  ;;  %921 = vmatpush3.bf16.msra.mxu0 %v918_v44 }
 0x136   :  { %v216_v4 = vmul.f32 0.125, %v209_v2  ;;  %923 = vmatprep.subr.bf16.mxu0 %v922_v47 }
 0x137   :  { %v219_v5 = vadd.f32 1e-05, %v217_v3 }
 0x138   :  { %v218_v6 = vadd.f32 1e-05, %v216_v4 }
 0x139   :  { %949 = vrsqrt.f32 %v219_v5  ;;  %925 = vmatpush3.bf16.msra.mxu0 %v922_v47 }
 0x13a   :  { %951 = vrsqrt.f32 %v218_v6 }
 0x143   :  { %v950_v11 = vpop.eup %949 }
 0x144   :  { %v952_v12 = vpop.eup %951  ;;  %v223_v13 = vmul.f32 %v950_v11, %v92_v9 }
 0x145   :  { %v222_v14 = vmul.f32 %v952_v12, %v92_v9 }
 0x146   :  { %v231_v15 = vrot.slane %v223_v13, %v1120_v10 }
 0x147   :  { %v227_v17 = vrot.slane %v222_v14, %v1120_v10 }
 0x148   :  { %v233_v18 = vmul.f32 %v231_v15, %v201_v51 }
 0x149   :  { %v232_v19 = vmul.f32 %v227_v17, %v200_v52 }
 0x14a   :  { %v239_v20 = vadd.f32 %v717_v16, %v233_v18 }
 0x14b   :  { %v238_v21 = vadd.f32 %v717_v16, %v232_v19 }
 0x14c   :  { %v241_v23 = vmax.f32 %v239_v20, 0.0 }
 0x14d   :  { %v240_v22 = vmax.f32 %v238_v21, 0.0 }
 0x14f   :  { %809 = vmatprep.mubr.f32.mxu1 %v240_v22 }
 0x150   :  { %810 = vmatmul.mubr.f32.vlgmr.msra.gmra.mrb[0].mxu1 %v241_v23 }
 0x223   :  { %v811_v49 = vpop.f32.mrb[0].mxu1 }
 0x224   :  { %v318_v50 = vadd.f32 %v811_v49, %v718_v48  ;;  %v312_v51 = vpop.f32.mrb[1].mxu1 }
 0x225   :  { %v313_v52 = vadd.f32 %v718_v48, %v312_v51 }
 0x226   :  { %v327_v53 = vrot.slane %v318_v50, 4 }
 0x227   :  { %v321_v54 = vrot.slane %v313_v52, 4 }
 0x228   :  { %v328_v55 = vadd.f32 %v327_v53, %v318_v50 }
 0x229   :  { %v322_v56 = vadd.f32 %v321_v54, %v313_v52 }
 0x22a   :  { %v329_v57 = vrot.slane %v328_v55, 2 }
 0x22b   :  { %v323_v58 = vrot.slane %v322_v56, 2 }
 0x22c   :  { %v330_v59 = vadd.f32 %v329_v57, %v328_v55 }
 0x22d   :  { %v324_v60 = vadd.f32 %v323_v58, %v322_v56 }
 0x22e   :  { %v331_v61 = vrot.slane %v330_v59, 1 }
 0x22f   :  { %v325_v62 = vrot.slane %v324_v60, 1 }
 0x230   :  { %v332_v63 = vadd.f32 %v331_v61, %v330_v59 }
 0x231   :  { %v326_v0 = vadd.f32 %v325_v62, %v324_v60 }
 0x232   :  { %v334_v1 = vmul.f32 0.125, %v332_v63 }
 0x233   :  { %v333_v2 = vmul.f32 0.125, %v326_v0 }
 0x234   :  { %v336_v3 = vsub.f32 %v318_v50, %v334_v1 }
 0x235   :  { %v335_v4 = vsub.f32 %v313_v52, %v333_v2 }
 0x236   :  { %v338_v5 = vmul.f32 %v336_v3, %v336_v3 }
 0x237   :  { %v337_v6 = vmul.f32 %v335_v4, %v335_v4 }
 0x238   :  { %v345_v8 = vrot.slane %v338_v5, 4 }
 0x239   :  { %v339_v9 = vrot.slane %v337_v6, 4 }
 0x23a   :  { %v346_v11 = vadd.f32 %v345_v8, %v338_v5 }
 0x23b   :  { %v340_v12 = vadd.f32 %v339_v9, %v337_v6 }
 0x23c   :  { %v347_v13 = vrot.slane %v346_v11, 2 }
 0x23d   :  { %v341_v14 = vrot.slane %v340_v12, 2 }
 0x23e   :  { %v348_v15 = vadd.f32 %v347_v13, %v346_v11 }
 0x23f   :  { %v342_v16 = vadd.f32 %v341_v14, %v340_v12 }
 0x240   :  { %v349_v17 = vrot.slane %v348_v15, 1 }
 0x241   :  { %v343_v18 = vrot.slane %v342_v16, 1 }
 0x242   :  { %v350_v19 = vadd.f32 %v349_v17, %v348_v15 }
 0x243   :  { %v344_v20 = vadd.f32 %v343_v18, %v342_v16 }
 0x244   :  { %v352_v21 = vmul.f32 0.125, %v350_v19 }
 0x245   :  { %v351_v22 = vmul.f32 0.125, %v344_v20 }
 0x246   :  { %v354_v23 = vadd.f32 1e-05, %v352_v21 }
 0x247   :  { %v353_v24 = vadd.f32 1e-05, %v351_v22 }
 0x248   :  { %953 = vrsqrt.f32 %v354_v23 }
 0x249   :  { %955 = vrsqrt.f32 %v353_v24 }
 0x252   :  { %v954_v26 = vpop.eup %953 }
 0x253   :  { %v956_v27 = vpop.eup %955  ;;  %v358_v28 = vmul.f32 %v954_v26, %v95_v25 }
 0x254   :  { %v357_v29 = vmul.f32 %v956_v27, %v95_v25 }
 0x255   :  { %v366_v30 = vrot.slane %v358_v28, %v1120_v10 }
 0x256   :  { %v362_v32 = vrot.slane %v357_v29, %v1120_v10 }
 0x257   :  { %v368_v33 = vmul.f32 %v366_v30, %v336_v3 }
 0x258   :  { %v367_v34 = vmul.f32 %v362_v32, %v335_v4 }
 0x259   :  { %v374_v35 = vadd.f32 %v719_v31, %v368_v33 }
 0x25a   :  { %v373_v36 = vadd.f32 %v719_v31, %v367_v34 }
 0x25b   :  { %v376_v38 = vmax.f32 %v374_v35, 0.0 }
 0x25c   :  { %v375_v37 = vmax.f32 %v373_v36, 0.0 }
 0x25e   :  { %844 = vmatprep.mubr.f32.mxu0 %v375_v37 }
 0x25f   :  { %845 = vmatmul.mubr.f32.vlgmr.msra.gmra.mrb[2].mxu0 %v376_v38 }
 0x332   :  { %v846_v39 = vpop.f32.mrb[2].mxu0 }
 0x333   :  { %v472_v40 = vrot.slane %v846_v39, 4  ;;  %v443_v41 = vpop.f32.mrb[3].mxu0 }
 0x334   :  { %v466_v42 = vrot.slane %v443_v41, 4  ;;  %v452_v43 = vsub.f32 %v443_v41, %v846_v39 }
 0x335   :  { %v473_v44 = vadd.f32 %v846_v39, %v472_v40 }
 0x336   :  { %v467_v45 = vadd.f32 %v466_v42, %v443_v41  ;;  %v453_v46 = vmul.f32 %v452_v43, %v452_v43 }
 0x337   :  { %v474_v47 = vrot.slane %v473_v44, 2 }
 0x338   :  { %v468_v48 = vrot.slane %v467_v45, 2  ;;  %454 = vadd.xlane.f32.xlu0 %v453_v46 }
 0x339   :  { %v475_v10 = vadd.f32 %v474_v47, %v473_v44 }
 0x33a   :  { %v469_v49 = vadd.f32 %v468_v48, %v467_v45 }
 0x33b   :  { %v476_v50 = vrot.slane %v475_v10, 1 }
 0x33c   :  { %v470_v51 = vrot.slane %v469_v49, 1 }
 0x33d   :  { %v477_v52 = vadd.f32 %v476_v50, %v475_v10 }
 0x33e   :  { %v471_v53 = vadd.f32 %v470_v51, %v469_v49 }
 0x33f   :  { %v479_v54 = vmul.f32 0.125, %v477_v52 }
 0x340   :  { %v478_v55 = vmul.f32 0.125, %v471_v53 }
 0x341   :  { %v481_v56 = vsub.f32 %v846_v39, %v479_v54 }
 0x342   :  { %v480_v57 = vsub.f32 %v443_v41, %v478_v55  ;;  %v634_v55 = vand.u32 127, %v224_v7 }
 0x343   :  { %v491_v58 = vmul.f32 %v481_v56, %v481_v56 }
 0x344   :  { %v482_v59 = vmul.f32 %v480_v57, %v480_v57  ;;  %851 = vmatprep.mubr.f32.mxu1 %v480_v57  ;;  %v926_v60 = vpack.c.bf16 %v481_v56, %v480_v57  ;;  %vm635_vm6 = vcmp.lt.s32.totalorder %v634_v55, 8 }
 0x345   :  { %v492_v61 = vrot.slane %v491_v58, 4  ;;  %vm636_vm8 = vmxor %vm1050_vm7, %vm635_vm6 }
 0x346   :  { %v483_v62 = vrot.slane %v482_v59, 4  ;;  %927 = vmatprep.subr.bf16.mxu1 %v926_v60  ;;  %vm639_vm9 = vmxor %vm635_vm6, %vm1050_vm7 }
 0x347   :  { %v493_v63 = vadd.f32 %v492_v61, %v491_v58  ;;  %929 = vmatpush3.bf16.xpose.msra.mxu1 %v926_v60  ;;  %vm638_vm10 = vmxor %vm636_vm8, %vm1050_vm7 }
 0x348   :  { %v484_v0 = vadd.f32 %v483_v62, %v482_v59 }
 0x349   :  { %v494_v1 = vrot.slane %v493_v63, 2 }
 0x34a   :  { %v485_v2 = vrot.slane %v484_v0, 2 }
 0x34b   :  { %v495_v3 = vadd.f32 %v494_v1, %v493_v63 }
 0x34c   :  { %v486_v4 = vadd.f32 %v485_v2, %v484_v0 }
 0x34d   :  { %v496_v5 = vrot.slane %v495_v3, 1 }
 0x34e   :  { %v487_v6 = vrot.slane %v486_v4, 1  ;;  %852 = vmatmul.mubr.f32.vlgmr.msra.gmra.mrb[2].mxu1 %v481_v56 }
 0x34f   :  { %v497_v8 = vadd.f32 %v496_v5, %v495_v3 }
 0x350   :  { %v488_v9 = vadd.f32 %v487_v6, %v486_v4 }
 0x351   :  { %v498_v11 = vmul.f32 0.14285715, %v497_v8 }
 0x352   :  { %v490_v12 = vmul.f32 0.14285715, %v488_v9 }
 0x353   :  { %v507_v13 = vadd.f32 0.0001, %v498_v11  ;;  %v670_v14 = vmul.f32 %v498_v11, %v498_v11 }
 0x354   :  { %v499_v15 = vadd.f32 0.0001, %v490_v12  ;;  %v658_v33 = vmul.f32 %v490_v12, %v490_v12 }
 0x355   :  { %957 = vrsqrt.f32 %v507_v13  ;;  %v1139_v16 = vsel %vm517_vm1, %v670_v14, 0.0  ;;  %vm510_vm2 = vcmp.eq.f32.partialorder %v507_v13, inf  ;;  %v513_v20 = vand.u32 2147483648, %v507_v13 }
 0x356   :  { %959 = vrsqrt.f32 %v499_v15  ;;  %vm512_vm3 = vcmp.eq.f32.partialorder %v507_v13, 0.0  ;;  %vm502_vm4 = vcmp.eq.f32.partialorder %v499_v15, inf  ;;  %v505_v23 = vand.u32 2147483648, %v499_v15 }
 0x357   :  { %vm504_vm5 = vcmp.eq.f32.partialorder %v499_v15, 0.0  ;;  %v659_v34 = vsel %vm517_vm1, %v658_v33, 0.0 }
 0x35f   :  { %v958_v17 = vpop.eup %957 }
 0x360   :  { %v960_v18 = vpop.eup %959  ;;  %v509_v19 = vmul.f32 %v958_v17, %v507_v13 }
 0x361   :  { %v501_v21 = vmul.f32 %v960_v18, %v499_v15 }
 0x362   :  { %v511_v22 = vsel %vm510_vm2, %v507_v13, %v509_v19 }
 0x363   :  { %v514_v24 = vsel %vm512_vm3, %v513_v20, %v511_v22  ;;  %v503_v25 = vsel %vm502_vm4, %v499_v15, %v501_v21 }
 0x364   :  { %v534_v26 = vsub.f32 1.0, %v514_v24  ;;  %v506_v27 = vsel %vm504_vm5, %v505_v23, %v503_v25 }
 0x365   :  { %v515_v28 = vsub.f32 1.0, %v506_v27 }
 0x366   :  { %v535_v29 = vmax.f32 %v534_v26, 0.0 }
 0x367   :  { %v516_v30 = vmax.f32 %v515_v28, 0.0 }
 0x368   :  { %v536_v31 = vsel %vm517_vm1, %v535_v29, 0.0 }
 0x369   :  { %537 = vadd.xlane.f32.xlu1 %v536_v31  ;;  %v518_v32 = vsel %vm517_vm1, %v516_v30, 0.0 }
 0x36a   :  { %519 = vadd.xlane.f32.xlu0 %v518_v32 }
 0x36e   :  { %660 = vadd.xlane.f32.xlu0 %v659_v34 }
 0x3c5   :  { %v455_v35 = vpop.xlane.xlu0 %454 }
 0x3c6   :  { %v456_v36 = vrot.slane %v455_v35, 4 }
 0x3c8   :  { %v457_v37 = vadd.f32 %v456_v36, %v455_v35 }
 0x3ca   :  { %v458_v38 = vrot.slane %v457_v37, 2 }
 0x3cc   :  { %v459_v39 = vadd.f32 %v458_v38, %v457_v37 }
 0x3ce   :  { %v460_v40 = vrot.slane %v459_v39, 1 }
 0x3d0   :  { %v461_v41 = vadd.f32 %v460_v40, %v459_v39 }
 0x3d2   :  { %930 = vpush %v461_v41 }
 0x3f6   :  { %v538_v42 = vpop.xlane.xlu1 %537 }
 0x3f7   :  { %v539_v43 = vrot.slane %v538_v42, 4  ;;  %v520_v44 = vpop.xlane.xlu0 %519 }
 0x3f8   :  { %v521_v45 = vrot.slane %v520_v44, 4 }
 0x3f9   :  { %v540_v46 = vadd.f32 %v539_v43, %v538_v42 }
 0x3fa   :  { %v522_v47 = vadd.f32 %v521_v45, %v520_v44 }
 0x3fb   :  { %v541_v48 = vrot.slane %v540_v46, 2  ;;  %v661_v7 = vpop.xlane.xlu0 %660 }
 0x3fc   :  { %v523_v10 = vrot.slane %v522_v47, 2  ;;  %v662_v1 = vrot.slane %v661_v7, 4 }
 0x3fd   :  { %v542_v49 = vadd.f32 %v541_v48, %v540_v46 }
 0x3fe   :  { %v524_v50 = vadd.f32 %v523_v10, %v522_v47  ;;  %v663_v2 = vadd.f32 %v662_v1, %v661_v7 }
 0x3ff   :  { %v543_v51 = vrot.slane %v542_v49, 1 }
 0x400   :  { %v525_v52 = vrot.slane %v524_v50, 1  ;;  %v664_v3 = vrot.slane %v663_v2, 2 }
 0x401   :  { %v544_v53 = vadd.f32 %v543_v51, %v542_v49 }
 0x402   :  { %v526_v54 = vadd.f32 %v525_v52, %v524_v50  ;;  %v665_v8 = vadd.f32 %v664_v3, %v663_v2 }
 0x403   :  { %s1144_s3 = spop %930 }
 0x404   :  { %s465_s10 = smul.f32 0.0009765625, %s1144_s3  ;;  %932 = vpush %v526_v54  ;;  %v666_v15 = vrot.slane %v665_v8, 1 }
 0x405   :  { %934 = vpush %v544_v53 }
 0x406   :  { %692 = sst [smem:[#allocation8 + $0x1]] %s465_s10  ;;  %s685_s17 = smul.f32 25.0, %s465_s10  ;;  %v667_v20 = vadd.f32 %v666_v15, %v665_v8 }
 0x421   :  { %v853_v56 = vpop.f32.mrb[2].mxu1 }
 0x422   :  { %v641_v57 = vmul.f32 %v853_v56, %v853_v56  ;;  %v619_v58 = vpop.f32.mrb[3].mxu1 }
 0x423   :  { %v640_v59 = vmul.f32 %v619_v58, %v619_v58 }
 0x424   :  { %v643_v60 = vsel %vm639_vm9, %v641_v57, 0.0 }
 0x425   :  { %v642_v61 = vsel %vm638_vm10, %v640_v59, 0.0  ;;  %v646_v62 = vsel %vm644_vm11, %v643_v60, 0.0 }
 0x426   :  { %v645_v63 = vsel %vm644_vm11, %v642_v61, 0.0 }
 0x427   :  { %v647_v0 = vadd.f32 %v646_v62, %v645_v63 }
 0x429   :  { %648 = vadd.xlane.f32.xlu1 %v647_v0 }
 0x42d   :  { %672 = vadd.xlane.f32.xlu1 %v1139_v16 }
 0x435   :  { %s933_s1 = spop %932 }
 0x436   :  { %s530_s11 = smul.f32 0.0078125, %s933_s1  ;;  %s935_s12 = spop %934 }
 0x437   :  { %s548_s13 = smul.f32 0.0078125, %s935_s12 }
 0x438   :  { %s533_s14 = smul.f32 0.5, %s530_s11 }
 0x439   :  { %s551_s15 = smul.f32 0.5, %s548_s13 }
 0x43b   :  { %s552_s16 = sadd.f32 %s551_s15, %s533_s14 }
 0x43d   :  { %s686_s19 = smul.f32 25.0, %s552_s16  ;;  %694 = sst [smem:[#allocation8 + $0x2]] %s552_s16 }
 0x43f   :  { %s1153_s20 = sadd.f32 %s686_s19, %s685_s17 }
 0x4b6   :  { %v649_v4 = vpop.xlane.xlu1 %648 }
 0x4b7   :  { %v650_v5 = vrot.slane %v649_v4, 4 }
 0x4b9   :  { %v651_v6 = vadd.f32 %v650_v5, %v649_v4 }
 0x4ba   :  { %v673_v9 = vpop.xlane.xlu1 %672 }
 0x4bb   :  { %v652_v11 = vrot.slane %v651_v6, 2  ;;  %v674_v12 = vrot.slane %v673_v9, 4 }
 0x4bd   :  { %v675_v13 = vadd.f32 %v674_v12, %v673_v9  ;;  %v653_v14 = vadd.f32 %v652_v11, %v651_v6 }
 0x4bf   :  { %v676_v16 = vrot.slane %v675_v13, 2  ;;  %v654_v17 = vrot.slane %v653_v14, 1 }
 0x4c1   :  { %v677_v18 = vadd.f32 %v676_v16, %v675_v13  ;;  %v655_v19 = vadd.f32 %v654_v17, %v653_v14 }
 0x4c3   :  { %936 = vpush %v655_v19  ;;  %v678_v21 = vrot.slane %v677_v18, 1 }
 0x4c4   :  { %938 = vpush %v667_v20 }
 0x4c5   :  { %v679_v22 = vadd.f32 %v678_v21, %v677_v18 }
 0x4c7   :  { %940 = vpush %v679_v22 }
 0x4f4   :  { %s937_s21 = spop %936 }
 0x4f5   :  { %s657_s22 = smul.f32 0.020408163, %s937_s21  ;;  %s939_s0 = spop %938 }
 0x4f7   :  { %s669_s18 = ssub.f32 %s657_s22, %s939_s0 }
 0x4f8   :  { %s941_s23 = spop %940 }
 0x4f9   :  { %s681_s24 = ssub.f32 %s669_s18, %s941_s23 }
 0x4fb   :  { %s684_s27 = smul.f32 0.0078125, %s681_s24 }
 0x4fd   :  { %s688_s28 = sadd.f32 %s1153_s20, %s684_s27 }
 0x4fe   :  { %696 = sst [smem:[#allocation8 + $0x3]] %s684_s27 }
 0x4ff   :  { %690 = sst [smem:[#allocation8]] %s688_s28 }
 0x500   :  { %1038 = shalt.err (!%p1035_p0)
}
 0x501   :  { %s1051_s30 = smov [#allocation8]  }
 0x502   :  { %706 = dma.smem_to_vmem %s1051_s30, 16, %s704_s26, [#allocation4]  }
 0x503   :  { %1043 = dma.done.wait [#allocation4], 16  }
 0x504   :  { %1044 = vsyncadd [#allocation4], 4294967280 }
 0x505   :  { %710 = sfence }
 0x506   :  { %711 = vsyncpa [#allocation3], 1 }
 0x507   :  { %712 = vsyncpa [#allocation6], 1 }
 0x508   :  { %713 = vsyncpa [#allocation4], 1 }

</bundles_post_ra>
